<compile_context>
chip_gen: v7x
topology: tpu7x:2x2x1
jax: 0.10.0
libtpu: 0.0.40
codegen_flags: <defaults>
</compile_context>

<pallas_src>
import functools

import jax
import jax.numpy as jnp
from jax.experimental import pallas as pl
from jax.experimental.pallas import tpu as pltpu

BANDWIDTH = 10.0              # Laplace kernel bandwidth (deterministic hyperparameter)
_VMEM_CAP = 48 << 20          # safe scoped-VMEM ceiling on every generation (v7x: 64 MiB/TC)


def _round_up(x, m):
    return (x + m - 1) // m * m


def _use_bf16_eup():
    """bf16 sqrt/exp only on v6e and later (v5e/v4/... have no bf16 VPU/EUP)."""
    try:
        kind = jax.devices()[0].device_kind.lower()
    except Exception:
        return False
    return not any(old in kind for old in ("v2", "v3", "v4", "v5"))


def _laplace_km_matmul_kernel(xx_ref, cc_ref, x_ref, ct_ref, w_ref, o_ref, *, eup_bf16):
    """One (tb, tn) tile of the Laplace kernel matrix, folded into pred.

    batch and centers arrive pre-scaled by 1/BANDWIDTH, so
        sq = ||x/bw||^2 + ||c/bw||^2 - 2 (x/bw).(c/bw) = (||x - c|| / bw)^2
    and kmat = exp(-sqrt(sq)) with no post-sqrt multiply.
    """
    j = pl.program_id(1)                                   # reduction over center tiles

    @pl.when(j == 0)
    def _():
        o_ref[...] = jnp.zeros_like(o_ref)                 # output block is the accumulator

    # MXU: bf16 operands, f32 accumulation; centers pre-transposed (D_pad, tn).
    # TODO(synk): bf16 x.c^T loses precision for extremely close high-D pairs;
    # switch this dot to f32 if downstream RFM accuracy requires it.
    xc = jnp.dot(x_ref[...], ct_ref[...], preferred_element_type=jnp.float32)   # (tb, tn)
    sq = jnp.maximum(xx_ref[...] + cc_ref[...] - 2.0 * xc, 0.0)

    if eup_bf16:
        # v6e / v7x: bf16 EUP ~2x sqrt/exp throughput; kmat feeds a bf16 matmul anyway.
        kmat = jnp.exp(-jnp.sqrt(sq.astype(jnp.bfloat16)))
    else:
        # v5e and older: keep the transcendental chain in f32.
        kmat = jnp.exp(-jnp.sqrt(sq)).astype(jnp.bfloat16)

    # Accumulate straight into the resident f32 output block (no scratch, no copy).
    o_ref[...] += jnp.dot(kmat, w_ref[...], preferred_element_type=jnp.float32)


def prepare_params(centers, weight, *, tn_max=512):
    """One-time preprocessing of the fixed model parameters (centers / weight).

    Pad / transpose / bf16-cast of the parameters and the center norms are
    hoisted out of the per-call forward (they depend only on the parameters).
    Returns an opaque tuple consumed by standard_kernel_model_forward.
    """
    N, D = centers.shape
    Nw, Y = weight.shape
    assert N == Nw, "centers / weight row mismatch"

    # Lane-aligned center tile; shrink when padding waste would exceed ~25%.
    tn = min(_round_up(tn_max, 128), _round_up(N, 128))
    while tn > 128 and _round_up(N, tn) > 1.25 * _round_up(N, 128):
        tn //= 2
    N_pad = _round_up(N, tn)
    D_pad = _round_up(D, 128)       # lane/sublane-aligned matmul operands
    Y_pad = _round_up(Y, 128)       # lane-dense output / accumulator

    # Fold 1/BANDWIDTH into both operands: the kernel computes exp(-sqrt(.)).
    centers_f = jnp.pad(centers.astype(jnp.float32) * (1.0 / BANDWIDTH),
                        ((0, N_pad - N), (0, D_pad - D)))
    cc_s = jnp.sum(centers_f * centers_f, axis=-1)[None, :]          # (1, N_pad) f32
    ct_bf = centers_f.T.astype(jnp.bfloat16)                         # (D_pad, N_pad)
    # Zero-padded center rows contribute nothing because their weight rows are zero.
    w_bf = jnp.pad(weight.astype(jnp.float32),
                   ((0, N_pad - N), (0, Y_pad - Y))).astype(jnp.bfloat16)   # (N_pad, Y_pad)

    return (cc_s, ct_bf, w_bf, int(tn), int(D), int(Y))


@functools.partial(jax.jit, static_argnames=("tn", "y_dim", "eup_bf16", "tb_max"))
def _forward_impl(batch, cc_s, ct_bf, w_bf, *, tn, y_dim, eup_bf16, tb_max):
    B, D = batch.shape
    D_pad, N_pad = ct_bf.shape
    Y_pad = w_bf.shape[1]

    # ---- batch (row) tile: as big as possible so centers^T / weight are
    # re-streamed from HBM as few times as possible (biggest lever on v5e/v6e),
    # but keep >= 2 row-blocks so both v7x TensorCores get work when B allows.
    tb = min(tb_max, _round_up(B, 8))
    if B > 8 and _round_up(B, tb) // tb < 2 and tb >= 256:
        tb = _round_up((B + 1) // 2, 8)
    # TODO(synk): for tiny-B serving (a single row-block) the N reduction could
    # additionally be split across the two v7x TensorCores with per-core partial sums.

    # ---- shrink tiles if a conservative (triple-buffered) VMEM estimate would
    # blow the scoped limit.
    def _need(tb_, tn_):
        return (2 * (tb_ * 4 + tn_ * 4 + tb_ * D_pad * 2 + tb_ * Y_pad * 4)
                + 3 * (D_pad * tn_ * 2 + tn_ * Y_pad * 2)
                + (4 << 20))

    while _need(tb, tn) > _VMEM_CAP:
        if tb > 128:
            tb = max(128, _round_up(tb // 2, 8))
        elif tn > 128:
            tn //= 2
        else:
            break

    B_pad = _round_up(B, tb)
    n_j = N_pad // tn
    vmem_limit = int(min(max(_need(tb, tn), 32 << 20), _VMEM_CAP))

    # ---- per-call batch preprocessing only (parameters were prepared once).
    x_s = batch.astype(jnp.float32) * (1.0 / BANDWIDTH)
    x_s = jnp.pad(x_s, ((0, B_pad - B), (0, D_pad - D)))
    xx_s = jnp.sum(x_s * x_s, axis=-1, keepdims=True)                # (B_pad, 1) f32
    x_bf = x_s.astype(jnp.bfloat16)                                  # (B_pad, D_pad)

    grid = (B_pad // tb, n_j)

    # Triple-buffer the two inputs whose block index changes every inner step
    # (hides DMA latency at grid-step boundaries); VMEM headroom is ample.
    if n_j >= 3:
        ct_spec = pl.BlockSpec((D_pad, tn), lambda i, j: (0, j),
                               pipeline_mode=pl.Buffered(3))
        w_spec = pl.BlockSpec((tn, Y_pad), lambda i, j: (j, 0),
                              pipeline_mode=pl.Buffered(3))
    else:
        ct_spec = pl.BlockSpec((D_pad, tn), lambda i, j: (0, j))
        w_spec = pl.BlockSpec((tn, Y_pad), lambda i, j: (j, 0))

    cost = pl.CostEstimate(
        flops=2 * B_pad * N_pad * (D_pad + Y_pad) + 6 * B_pad * N_pad,
        transcendentals=2 * B_pad * N_pad,                 # sqrt + exp per kmat element
        bytes_accessed=(B_pad * D_pad * 2 + B_pad * 4 + B_pad * Y_pad * 4
                        + grid[0] * (N_pad * D_pad * 2 + N_pad * Y_pad * 2 + N_pad * 4)),
    )

    out = pl.pallas_call(
        functools.partial(_laplace_km_matmul_kernel, eup_bf16=eup_bf16),
        out_shape=jax.ShapeDtypeStruct((B_pad, Y_pad), jnp.float32),
        grid_spec=pltpu.PrefetchScalarGridSpec(
            num_scalar_prefetch=0,
            grid=grid,
            in_specs=[
                pl.BlockSpec((tb, 1), lambda i, j: (i, 0)),        # ||x/bw||^2    (f32)
                pl.BlockSpec((1, tn), lambda i, j: (0, j)),        # ||c/bw||^2    (f32)
                pl.BlockSpec((tb, D_pad), lambda i, j: (i, 0)),    # batch/bw      (bf16)
                ct_spec,                                           # centers^T/bw  (bf16)
                w_spec,                                            # weight        (bf16)
            ],
            out_specs=pl.BlockSpec((tb, Y_pad), lambda i, j: (i, 0)),
        ),
        compiler_params=pltpu.CompilerParams(
            dimension_semantics=("parallel", "arbitrary"),
            vmem_limit_bytes=vmem_limit,
        ),
        cost_estimate=cost,
    )(xx_s, cc_s, x_bf, ct_bf, w_bf)

    return out[:B, :y_dim]


def standard_kernel_model_forward(batch, prepared, *, tb_max=512):
    """pred = laplace_kernel(batch, centers) @ weight, using prepared params."""
    cc_s, ct_bf, w_bf, tn, d_dim, y_dim = prepared
    assert batch.shape[1] == d_dim, "batch feature dim mismatch"
    return _forward_impl(batch, cc_s, ct_bf, w_bf,
                         tn=tn, y_dim=y_dim, eup_bf16=_use_bf16_eup(),
                         tb_max=int(tb_max))


def _reference_forward(batch, centers, weight):
    """Pure-JAX f32 reference of the same forward pass."""
    sq = (
        jnp.sum(batch * batch, axis=-1, keepdims=True)
        + jnp.sum(centers * centers, axis=-1)[None, :]
        - 2.0 * batch @ centers.T
    )
    kmat = jnp.exp(-jnp.sqrt(jnp.maximum(sq, 0.0)) / BANDWIDTH)
    return kmat @ weight


if __name__ == "__main__":
    # Small, deterministic shapes consistent with the module:
    #   n_centers=16, x_dim=32, y_dim=4, batch=8
    B, D, N, Y = 8, 32, 16, 4

    key = jax.random.PRNGKey(0)
    k_batch, k_centers, k_weight = jax.random.split(key, 3)

    batch = jax.random.normal(k_batch, (B, D), dtype=jnp.float32)
    centers = jax.random.normal(k_centers, (N, D), dtype=jnp.float32)
    # Module __init__ uses zeros; we use a deterministic non-trivial weight so
    # the fused matmul path is actually exercised.
    weight = jax.random.normal(k_weight, (N, Y), dtype=jnp.float32)

    prepared = prepare_params(centers, weight)          # one-time parameter prep
    pred = standard_kernel_model_forward(batch, prepared)
    pred = jax.block_until_ready(pred)

    ref = _reference_forward(batch, centers, weight)
    assert pred.shape == (B, Y)
    # bf16 MXU operands / bf16 EUP path with f32 accumulation -> loosened tolerance.
    assert jnp.allclose(pred, ref, atol=3e-2, rtol=3e-2), "mismatch vs reference"

    print("KERNEL_OK")
</pallas_src>

<mosaic_0001>
module attributes {stable_mosaic.version = 11 : i64} {
  func.func @_laplace_km_matmul_kernel(%arg0: i32, %arg1: i32, %arg2: memref<8x1xf32, #tpu.memory_space<vmem>>, %arg3: memref<1x128xf32, #tpu.memory_space<vmem>>, %arg4: memref<8x128xbf16, #tpu.memory_space<vmem>>, %arg5: memref<128x128xbf16, #tpu.memory_space<vmem>>, %arg6: memref<128x128xbf16, #tpu.memory_space<vmem>>, %arg7: memref<8x128xf32, #tpu.memory_space<vmem>>) attributes {dimension_semantics = [#tpu.dimension_semantics<parallel>, #tpu.dimension_semantics<arbitrary>], iteration_bounds = array<i64: 1, 1>, scalar_prefetch = 0 : i64, scratch_operands = 0 : i64, tpu.core_type = #tpu.core_type<tc>, window_params = [{transform_indices = @transform_0, window_bounds = array<i64: 8, 1>}, {transform_indices = @transform_1, window_bounds = array<i64: 1, 128>}, {transform_indices = @transform_2, window_bounds = array<i64: 8, 128>}, {transform_indices = @transform_3, window_bounds = array<i64: 128, 128>}, {transform_indices = @transform_4, window_bounds = array<i64: 128, 128>}, {transform_indices = @transform_5, window_bounds = array<i64: 8, 128>}]} {
    %c0_i32 = arith.constant 0 : i32
    %0 = arith.cmpi eq, %arg1, %c0_i32 : i32
    %1 = arith.extui %0 : i1 to i32
    %c0_i32_0 = arith.constant 0 : i32
    %2 = arith.cmpi ne, %1, %c0_i32_0 : i32
    scf.if %2 {
      %cst_18 = arith.constant 0.000000e+00 : f32
      %26 = vector.broadcast %cst_18 : f32 to vector<8x128xf32>
      %c0_19 = arith.constant 0 : index
      %c0_20 = arith.constant 0 : index
      %27 = vector.load %arg7[%c0_19, %c0_20] : memref<8x128xf32, #tpu.memory_space<vmem>>, vector<8x128xf32>
      tpu.vector_store %arg7[%c0_19, %c0_20], %26 {strides = array<i32>} : memref<8x128xf32, #tpu.memory_space<vmem>>, vector<8x128xf32>,
    } else {
    }
    %c0 = arith.constant 0 : index
    %c0_1 = arith.constant 0 : index
    %3 = vector.load %arg4[%c0, %c0_1] : memref<8x128xbf16, #tpu.memory_space<vmem>>, vector<8x128xbf16>
    %c0_2 = arith.constant 0 : index
    %c0_3 = arith.constant 0 : index
    %4 = vector.load %arg5[%c0_2, %c0_3] : memref<128x128xbf16, #tpu.memory_space<vmem>>, vector<128x128xbf16>
    %cst = arith.constant dense<0.000000e+00> : vector<8x128xf32>
    %5 = tpu.matmul %3, %4, %cst {dimension_numbers = #tpu.dot_dimension_numbers<[1], [0], [0], [1], [0, 0, 1, 1], [], []>} : vector<8x128xbf16>, vector<128x128xbf16>, vector<8x128xf32> -> vector<8x128xf32>
    %c0_4 = arith.constant 0 : index
    %c0_5 = arith.constant 0 : index
    %6 = vector.load %arg2[%c0_4, %c0_5] : memref<8x1xf32, #tpu.memory_space<vmem>>, vector<8x1xf32>
    %c0_6 = arith.constant 0 : index
    %c0_7 = arith.constant 0 : index
    %7 = vector.load %arg3[%c0_6, %c0_7] : memref<1x128xf32, #tpu.memory_space<vmem>>, vector<1x128xf32>
    %8 = vector.broadcast %6 : vector<8x1xf32> to vector<8x128xf32>
    %9 = vector.broadcast %7 : vector<1x128xf32> to vector<8x128xf32>
    %10 = arith.addf %8, %9 : vector<8x128xf32>
    %cst_8 = arith.constant 2.000000e+00 : f32
    %11 = vector.broadcast %cst_8 : f32 to vector<8x128xf32>
    %12 = arith.mulf %11, %5 : vector<8x128xf32>
    %13 = arith.subf %10, %12 : vector<8x128xf32>
    %cst_9 = arith.constant 0.000000e+00 : f32
    %14 = vector.broadcast %cst_9 : f32 to vector<8x128xf32>
    %15 = arith.maximumf %13, %14 : vector<8x128xf32>
    %16 = arith.truncf %15 : vector<8x128xf32> to vector<8x128xbf16>
    %17 = math.sqrt %16 : vector<8x128xbf16>
    %cst_10 = arith.constant 0.000000e+00 : bf16
    %18 = vector.broadcast %cst_10 : bf16 to vector<8x128xbf16>
    %19 = arith.subf %18, %17 : vector<8x128xbf16>
    %20 = math.exp %19 : vector<8x128xbf16>
    %c0_11 = arith.constant 0 : index
    %c0_12 = arith.constant 0 : index
    %21 = vector.load %arg7[%c0_11, %c0_12] : memref<8x128xf32, #tpu.memory_space<vmem>>, vector<8x128xf32>
    %c0_13 = arith.constant 0 : index
    %c0_14 = arith.constant 0 : index
    %22 = vector.load %arg6[%c0_13, %c0_14] : memref<128x128xbf16, #tpu.memory_space<vmem>>, vector<128x128xbf16>
    %cst_15 = arith.constant dense<0.000000e+00> : vector<8x128xf32>
    %23 = tpu.matmul %20, %22, %cst_15 {dimension_numbers = #tpu.dot_dimension_numbers<[1], [0], [0], [1], [0, 0, 1, 1], [], []>} : vector<8x128xbf16>, vector<128x128xbf16>, vector<8x128xf32> -> vector<8x128xf32>
    %24 = arith.addf %21, %23 : vector<8x128xf32>
    %c0_16 = arith.constant 0 : index
    %c0_17 = arith.constant 0 : index
    %25 = vector.load %arg7[%c0_16, %c0_17] : memref<8x128xf32, #tpu.memory_space<vmem>>, vector<8x128xf32>
    tpu.vector_store %arg7[%c0_16, %c0_17], %24 {strides = array<i32>} : memref<8x128xf32, #tpu.memory_space<vmem>>, vector<8x128xf32>,
    return
  }
  func.func @transform_0(%arg0: i32, %arg1: i32) -> (i32, i32) {
    %c0_i32 = arith.constant 0 : i32
    %c0_i32_0 = arith.constant 0 : i32
    return %arg0, %c0_i32 : i32, i32
  }
  func.func @transform_1(%arg0: i32, %arg1: i32) -> (i32, i32) {
    %c0_i32 = arith.constant 0 : i32
    %c0_i32_0 = arith.constant 0 : i32
    return %c0_i32, %arg1 : i32, i32
  }
  func.func @transform_2(%arg0: i32, %arg1: i32) -> (i32, i32) {
    %c0_i32 = arith.constant 0 : i32
    %c0_i32_0 = arith.constant 0 : i32
    return %arg0, %c0_i32 : i32, i32
  }
  func.func @transform_3(%arg0: i32, %arg1: i32) -> (i32, i32) {
    %c0_i32 = arith.constant 0 : i32
    %c0_i32_0 = arith.constant 0 : i32
    return %c0_i32, %arg1 : i32, i32
  }
  func.func @transform_4(%arg0: i32, %arg1: i32) -> (i32, i32) {
    %c0_i32 = arith.constant 0 : i32
    %c0_i32_0 = arith.constant 0 : i32
    return %arg1, %c0_i32 : i32, i32
  }
  func.func @transform_5(%arg0: i32, %arg1: i32) -> (i32, i32) {
    %c0_i32 = arith.constant 0 : i32
    %c0_i32_0 = arith.constant 0 : i32
    return %arg0, %c0_i32 : i32, i32
  }
}

</mosaic_0001>

<bundles_post_ra>
// kernel: _forward_impl.1
= control target key start
LH: loop header
LB: loop body
LE: loop exit
PB: predicated region body
PF: predicated region fallthrough
CT: control target
= control target key end

     0   :  { %10 = vsyncpa [#allocation3], 0  ;;  %s529_s0 = inlined_call_operand.vmem [shape: f32[8,1], index: 0, kind: input, shape index: {}]   ;;  %s530_s1 = inlined_call_operand.vmem [shape: f32[1,128], index: 1, kind: input, shape index: {}]   ;;  %s531_s2 = inlined_call_operand.vmem [shape: bf16[8,128], index: 2, kind: input, shape index: {}]   ;;  %s532_s3 = inlined_call_operand.hbm [shape: bf16[128,128], index: 3, kind: input, shape index: {}]   ;;  %s533_s4 = inlined_call_operand.hbm [shape: bf16[128,128], index: 4, kind: input, shape index: {}]   ;;  %s534_s5 = inlined_call_operand.vmem [shape: f32[8,128], index: 5, kind: output, shape index: {}]  }
   0x1   :  { %11 = vsyncpa [#allocation5], 0  ;;  %s456_s18 = smov [#allocation2]   ;;  %s408_s22 = scalar_lea.hbm %s532_s3, 1024 }
   0x2   :  { %s23_s19 = sshll.u32 %s456_s18, 4  ;;  %p409_p0 = scmp.ne.s32.totalorder %s532_s3, %s408_s22  ;;  %s24_s19 = int_to_ptr.vmem [resolvable:$true] %s23_s19 }
   0x3   :  { %p412_p1 = scmp.lt.u32.totalorder %s408_s22, %s532_s3 }
   0x5   :  { %p414_p2 = pnand %p412_p1, %p409_p0 }
   0x7   :  { %417 = shalt.err (!%p414_p2)
}
   0x8   :  { %s418_s27 = scalar_lea.vmem %s24_s19, 1024  ;;  %p423_p4 = scmp.lt.s32.totalorder %s24_s19, %s24_s19 }
   0x9   :  { %p419_p3 = scmp.ne.s32.totalorder %s24_s19, %s418_s27  ;;  %p424_p5 = scmp.lt.s32.totalorder %s418_s27, %s418_s27 }
   0xb   :  { %p425_p6 = por %p424_p5, %p423_p4 }
   0xd   :  { %p426_p7 = pnand %p425_p6, %p419_p3 }
   0xf   :  { %429 = shalt.err (!%p426_p7)
}
  0x10   :  { %s457_s28 = smov 64   ;;  %s458_s29 = smov 4  }
  0x11   :  { %29 = dma.hbm_to_vmem [thread:$0]  %s532_s3, 1024, %s24_s19, [#allocation3], %s457_s28, %s457_s28, %s458_s29  }
  0x12   :  { %s459_s7 = smov [#allocation4]   ;;  %s430_s11 = scalar_lea.hbm %s533_s4, 1024 }
  0x13   :  { %s35_s8 = sshll.u32 %s459_s7, 4  ;;  %p431_p8 = scmp.ne.s32.totalorder %s533_s4, %s430_s11  ;;  %s36_s8 = int_to_ptr.vmem [resolvable:$true] %s35_s8 }
  0x14   :  { %p434_p9 = scmp.lt.u32.totalorder %s430_s11, %s533_s4 }
  0x16   :  { %p436_p10 = pnand %p434_p9, %p431_p8 }
  0x18   :  { %439 = shalt.err (!%p436_p10)
}
  0x19   :  { %s440_s16 = scalar_lea.vmem %s36_s8, 1024  ;;  %p445_p12 = scmp.lt.s32.totalorder %s36_s8, %s36_s8 }
  0x1a   :  { %p441_p11 = scmp.ne.s32.totalorder %s36_s8, %s440_s16  ;;  %p446_p13 = scmp.lt.s32.totalorder %s440_s16, %s440_s16 }
  0x1c   :  { %p447_p0 = por %p446_p13, %p445_p12 }
  0x1e   :  { %p448_p1 = pnand %p447_p0, %p441_p11 }
  0x20   :  { %451 = shalt.err (!%p448_p1)
}
  0x21   :  { %41 = dma.hbm_to_vmem [thread:$0]  %s533_s4, 1024, %s36_s8, [#allocation5], %s457_s28, %s457_s28, %s458_s29  }
  0x22   :  { %452 = dma.done.wait [#allocation3], 1024  }
  0x23   :  { %453 = vsyncadd [#allocation3], 4294966272 }
  0x24   :  { %454 = dma.done.wait [#allocation5], 1024  }
  0x25   :  { %455 = vsyncadd [#allocation5], 4294966272  ;;  %v460_v0 = vmov 0.0   ;;  %vm461_vm0 = vmmov 0   ;;  %v462_v1 = vmov 0   ;;  %v388_v2 = vld [vmem:[#allocation2] sm:$0xff]  }
  0x26   :  { %340 = vmatprep.subr.bf16.mxu0 %v460_v0  ;;  %356 = vmatprep.mubr.msk.bf16.mxu0 %vm461_vm0, %v460_v0  ;;  %v389_v3 = vld [vmem:[#allocation2 + $0x8] sm:$0xff]   ;;  %v390_v4 = vld [vmem:[#allocation2 + $0x10] sm:$0xff]   ;;  %v391_v5 = vld [vmem:[#allocation2 + $0x18] sm:$0xff]  }
  0x27   :  { %387 = vset.pattern.permute.xlu0 %v462_v1  ;;  %360 = vmatprep.subr.bf16.mxu1 %v460_v0  ;;  %v159_v6 = vld [vmem:[%s529_s0] sm:$0xff]  ;;  %v393_v8 = vld [vmem:[#allocation2 + $0x28] sm:$0xff]   ;;  %v394_v9 = vld [vmem:[#allocation2 + $0x30] sm:$0xff]  }
  0x28   :  { %376 = vmatprep.mubr.msk.bf16.mxu1 %vm461_vm0, %v460_v0  ;;  %341 = vmatpush3.bf16.msra.mxu0 %v388_v2  ;;  %v392_v7 = vld [vmem:[#allocation2 + $0x20] sm:$0xff]   ;;  %v395_v10 = vld [vmem:[#allocation2 + $0x38] sm:$0xff]   ;;  %v397_v13 = vld [vmem:[#allocation4 + $0x8] sm:$0xff]  }
  0x29   :  { %342 = vmatprep.subr.bf16.mxu0 %v460_v0  ;;  %163 = vperm.xlu0 %387, %v159_v6   ;;  %v54_v11 = vld [vmem:[%s531_s2] sm:$0xf]  ;;  %v398_v14 = vld [vmem:[#allocation4 + $0x10] sm:$0xff]   ;;  %v399_v15 = vld [vmem:[#allocation4 + $0x18] sm:$0xff]  }
  0x2a   :  { %v396_v12 = vld [vmem:[#allocation4] sm:$0xff]   ;;  %v401_v17 = vld [vmem:[#allocation4 + $0x28] sm:$0xff]   ;;  %v402_v18 = vld [vmem:[#allocation4 + $0x30] sm:$0xff]  }
  0x2b   :  { %361 = vmatpush3.bf16.msra.mxu1 %v396_v12  ;;  %v400_v16 = vld [vmem:[#allocation4 + $0x20] sm:$0xff]   ;;  %v403_v19 = vld [vmem:[#allocation4 + $0x38] sm:$0xff]  }
  0x2c   :  { %343 = vmatpush3.bf16.msra.mxu0 %v389_v3  ;;  %362 = vmatprep.subr.bf16.mxu1 %v460_v0  ;;  %v313_v20 = vld [vmem:[%s530_s1] ss:$0 sm:$0xff] }
  0x2d   :  { %344 = vmatprep.subr.bf16.mxu0 %v460_v0 }
  0x2f   :  { %363 = vmatpush3.bf16.msra.mxu1 %v397_v13 }
  0x30   :  { %345 = vmatpush3.bf16.msra.mxu0 %v390_v4  ;;  %364 = vmatprep.subr.bf16.mxu1 %v460_v0 }
  0x31   :  { %346 = vmatprep.subr.bf16.mxu0 %v460_v0 }
  0x33   :  { %365 = vmatpush3.bf16.msra.mxu1 %v398_v14 }
  0x34   :  { %347 = vmatpush3.bf16.msra.mxu0 %v391_v5  ;;  %366 = vmatprep.subr.bf16.mxu1 %v460_v0 }
  0x35   :  { %348 = vmatprep.subr.bf16.mxu0 %v460_v0 }
  0x37   :  { %367 = vmatpush3.bf16.msra.mxu1 %v399_v15 }
  0x38   :  { %349 = vmatpush3.bf16.msra.mxu0 %v392_v7  ;;  %368 = vmatprep.subr.bf16.mxu1 %v460_v0 }
  0x39   :  { %350 = vmatprep.subr.bf16.mxu0 %v460_v0 }
  0x3b   :  { %369 = vmatpush3.bf16.msra.mxu1 %v400_v16 }
  0x3c   :  { %351 = vmatpush3.bf16.msra.mxu0 %v393_v8  ;;  %370 = vmatprep.subr.bf16.mxu1 %v460_v0 }
  0x3d   :  { %352 = vmatprep.subr.bf16.mxu0 %v460_v0 }
  0x3f   :  { %371 = vmatpush3.bf16.msra.mxu1 %v401_v17 }
  0x40   :  { %353 = vmatpush3.bf16.msra.mxu0 %v394_v9  ;;  %372 = vmatprep.subr.bf16.mxu1 %v460_v0 }
  0x41   :  { %354 = vmatprep.subr.bf16.mxu0 %v460_v0 }
  0x43   :  { %373 = vmatpush3.bf16.msra.mxu1 %v402_v18 }
  0x44   :  { %355 = vmatpush3.bf16.msra.mxu0 %v395_v10  ;;  %374 = vmatprep.subr.bf16.mxu1 %v460_v0 }
  0x47   :  { %357 = vmatmul.mubr.bf16.vlgmr.msra.gmra.mrb[0].mxu0 %v54_v11  ;;  %375 = vmatpush3.bf16.msra.mxu1 %v403_v19 }
  0xa8   :  { %v164_v21 = vpop.permute.xlu0 %163 }
  0xa9   :  { %v172_v22 = vadd.f32 %v313_v20, %v164_v21 }
 0x11a   :  { %v153_v23 = vpop.f32.mrb[0].mxu0 }
 0x11b   :  { %v173_v24 = vmul.f32 2.0, %v153_v23  ;;  %v358_v25 = vpop.f32.mrb[1].mxu0 }
 0x11c   :  { %v156_v26 = vpop.f32.mrb[2].mxu0 }
 0x11d   :  { %v174_v27 = vsub.f32 %v172_v22, %v173_v24  ;;  %v359_v28 = vpop.f32.mrb[3].mxu0 }
 0x11f   :  { %v175_v29 = vmax.f32 %v174_v27, 0.0 }
 0x121   :  { %v176_v30 = vpack.c.bf16 %v175_v29, %v175_v29 }
 0x123   :  { %404 = vrsqrt.bf16 %v176_v30  ;;  %vm180_vm1 = vcmp.eq.bf16.partialorder %v176_v30, 2139127680  ;;  %v185_v33 = vand.u32 2147516416, %v176_v30  ;;  %vm183_vm2 = vcmp.eq.bf16.partialorder %v176_v30, 0 }
 0x12e   :  { %v405_v31 = vpop.eup %404 }
 0x12f   :  { %v178_v32 = vmul.bf16 %v405_v31, %v176_v30 }
 0x131   :  { %v181_v34 = vsel %vm180_vm1, %v176_v30, %v178_v32 }
 0x132   :  { %v187_v35 = vsel %vm183_vm2, %v185_v33, %v181_v34 }
 0x133   :  { %v188_v36 = vsub.bf16 0, %v187_v35 }
 0x135   :  { %v190_v37 = vmul.bf16 1069105081, %v188_v36 }
 0x137   :  { %406 = vpow.bf16 %v190_v37 }
 0x142   :  { %v407_v38 = vpop.eup %406 }
 0x143   :  { %377 = vmatmul.mubr.bf16.vlgmr.msra.gmra.mrb[0].mxu1 %v407_v38 }
 0x216   :  { %v291_v39 = vpop.f32.mrb[0].mxu1 }
 0x217   :  { %v378_v40 = vpop.f32.mrb[1].mxu1  ;;  %298 = vst [vmem:[%s534_s5] sm:$0xff] %v291_v39 }
 0x218   :  { %v294_v41 = vpop.f32.mrb[2].mxu1 }
 0x219   :  { %v379_v42 = vpop.f32.mrb[3].mxu1 }
 0x21a   :  { %303 = vsyncpa [#allocation3], 1 }
 0x21b   :  { %304 = vsyncpa [#allocation5], 1 }

</bundles_post_ra>
